<compile_context>
chip_gen: v7x
topology: tpu7x:2x2x1
jax: 0.10.0
libtpu: 0.0.40
codegen_flags: <defaults>
</compile_context>

<pallas_src>
import functools

import jax
import jax.numpy as jnp
from jax.experimental import pallas as pl
from jax.experimental.pallas import tpu as pltpu

STATE_SIZE = 4
HIDDEN_SIZE = 64
ACTION_SIZE = 2

HIDDEN_PAD = 128   # hidden features padded to full lane width (unmasked vregs)
OUT_STORE = 8      # stored output lanes (>= ACTION_SIZE); tiny HBM writeback


def _round_up(x, m):
    return ((x + m - 1) // m) * m


def qnet_kernel(x_ref, w1_ref, b1_ref, w2_ref, b2_ref, w3_ref, b3_ref, out_ref):
    # One batch tile per grid step; weights/biases are VMEM-resident (constant
    # block index across the grid, so they are DMA'd once and reused).
    # bf16 MXU operands, f32 accumulation / bias / relu.
    x = x_ref[...]                                                       # (TB, S) bf16
    h1 = jnp.dot(x, w1_ref[...], preferred_element_type=jnp.float32) + b1_ref[...]
    h1 = jnp.maximum(h1, 0.0)                                            # (TB, 128) f32
    h2 = jnp.dot(h1.astype(jnp.bfloat16), w2_ref[...],
                 preferred_element_type=jnp.float32) + b2_ref[...]
    h2 = jnp.maximum(h2, 0.0)                                            # (TB, 128) f32
    out = jnp.dot(h2.astype(jnp.bfloat16), w3_ref[...],
                  preferred_element_type=jnp.float32)                    # (TB, 128) f32
    # Only the first OUT_STORE lanes carry real actions; store the narrow slab.
    out_ref[...] = out[:, :OUT_STORE] + b3_ref[...]                      # (TB, 8)


def prepare_params(params):
    """Zero-pad + cast weights ONCE, outside the per-call jitted forward.

    Zero padding keeps the math exactly equal to the unpadded network; the bf16
    cast of the matmul operands is the only source of numerical difference.
    """
    w1 = (jnp.zeros((STATE_SIZE, HIDDEN_PAD), jnp.float32)
          .at[:, :HIDDEN_SIZE].set(params["w1"])).astype(jnp.bfloat16)
    b1 = jnp.zeros((1, HIDDEN_PAD), jnp.float32).at[:, :HIDDEN_SIZE].set(params["b1"])
    w2 = (jnp.zeros((HIDDEN_PAD, HIDDEN_PAD), jnp.float32)
          .at[:HIDDEN_SIZE, :HIDDEN_SIZE].set(params["w2"])).astype(jnp.bfloat16)
    b2 = jnp.zeros((1, HIDDEN_PAD), jnp.float32).at[:, :HIDDEN_SIZE].set(params["b2"])
    # Keep w3 at 128 output lanes for a friendly MXU shape; only the store is 8 wide.
    w3 = (jnp.zeros((HIDDEN_PAD, HIDDEN_PAD), jnp.float32)
          .at[:HIDDEN_SIZE, :ACTION_SIZE].set(params["w3"])).astype(jnp.bfloat16)
    b3 = jnp.zeros((1, OUT_STORE), jnp.float32).at[:, :ACTION_SIZE].set(params["b3"])
    return tuple(jax.device_put(t) for t in (w1, b1, w2, b2, w3, b3))


@functools.partial(jax.jit, static_argnames=("block_batch",))
def qnetwork_forward(x, padded, *, block_batch=2048):
    """x: (B, state_size) float32. padded: output of prepare_params."""
    w1, b1, w2, b2, w3, b3 = padded
    B = x.shape[0]

    # Balanced batch tiling: fewest grid steps with minimal zero-row padding.
    # For large batches force >= 2 steps so the second v7x TensorCore gets work.
    min_steps = 2 if B >= 256 else 1
    n_steps = max(pl.cdiv(B, block_batch), min_steps)
    TB = _round_up(pl.cdiv(B, n_steps), 8)
    B_pad = n_steps * TB

    x_pad = (jnp.zeros((B_pad, STATE_SIZE), jnp.bfloat16)
             .at[:B, :].set(x.astype(jnp.bfloat16)))

    resident = lambda shape: pl.BlockSpec(shape, lambda i: (0, 0))

    flops = 2 * B_pad * (STATE_SIZE * HIDDEN_PAD + 2 * HIDDEN_PAD * HIDDEN_PAD)
    bytes_accessed = (2 * B_pad * STATE_SIZE                       # x (bf16)
                      + 4 * B_pad * OUT_STORE                      # out (f32)
                      + 2 * (STATE_SIZE * HIDDEN_PAD
                             + 2 * HIDDEN_PAD * HIDDEN_PAD)        # weights (bf16)
                      + 4 * (2 * HIDDEN_PAD + OUT_STORE))          # biases (f32)

    out_pad = pl.pallas_call(
        qnet_kernel,
        out_shape=jax.ShapeDtypeStruct((B_pad, OUT_STORE), jnp.float32),
        grid=(n_steps,),
        in_specs=[
            pl.BlockSpec((TB, STATE_SIZE), lambda i: (i, 0)),   # x: tiled over batch
            resident(w1.shape), resident(b1.shape),             # weights: VMEM-resident
            resident(w2.shape), resident(b2.shape),
            resident(w3.shape), resident(b3.shape),
        ],
        out_specs=pl.BlockSpec((TB, OUT_STORE), lambda i: (i, 0)),
        compiler_params=pltpu.CompilerParams(
            dimension_semantics=("parallel",)),                 # megacore on v7x
        cost_estimate=pl.CostEstimate(flops=flops, transcendentals=0,
                                      bytes_accessed=bytes_accessed),
    )(x_pad, w1, b1, w2, b2, w3, b3)

    # Drop batch padding and the zero-padded action lanes.
    return out_pad[:B, :ACTION_SIZE]


def init_params(key):
    """Deterministic init mimicking nn.Linear; stored pre-transposed as (in, out)."""
    ks = jax.random.split(key, 6)

    def linear(kw, kb, fan_in, fan_out):
        bound = 1.0 / jnp.sqrt(fan_in)
        # PyTorch stores weight as (out, in); we keep (in, out) for the kernel.
        w = jax.random.uniform(kw, (fan_in, fan_out), jnp.float32, -bound, bound)
        b = jax.random.uniform(kb, (1, fan_out), jnp.float32, -bound, bound)
        return w, b

    w1, b1 = linear(ks[0], ks[1], STATE_SIZE, HIDDEN_SIZE)
    w2, b2 = linear(ks[2], ks[3], HIDDEN_SIZE, HIDDEN_SIZE)
    w3, b3 = linear(ks[4], ks[5], HIDDEN_SIZE, ACTION_SIZE)
    return {"w1": w1, "b1": b1, "w2": w2, "b2": b2, "w3": w3, "b3": b3}


def reference_forward(x, p):
    h1 = jnp.maximum(x @ p["w1"] + p["b1"], 0.0)
    h2 = jnp.maximum(h1 @ p["w2"] + p["b2"], 0.0)
    return h2 @ p["w3"] + p["b3"]


if __name__ == "__main__":
    key = jax.random.PRNGKey(0)
    kx, kp = jax.random.split(key)
    params = init_params(kp)
    padded = prepare_params(params)   # pad/cast once, hoisted out of the hot path

    ok = True
    # Small RL-style batch and a larger, non-multiple-of-TB batch (remainder +
    # two-grid-step / megacore path).
    for batch in (8, 300):
        x = jax.random.normal(jax.random.fold_in(kx, batch),
                              (batch, STATE_SIZE), dtype=jnp.float32)
        out = jax.block_until_ready(qnetwork_forward(x, padded))
        ref = reference_forward(x, params)
        ok &= out.shape == (batch, ACTION_SIZE)
        # bf16 MXU operands -> not bit-exact vs the f32 reference; loosened tol.
        ok &= bool(jnp.allclose(out, ref, atol=2e-2, rtol=2e-2))

    assert ok, "mismatch vs JAX reference"
    print("KERNEL_OK")
</pallas_src>

<mosaic_0001>
module attributes {stable_mosaic.version = 11 : i64} {
  func.func @qnet_kernel(%arg0: i32, %arg1: memref<8x4xbf16, #tpu.memory_space<vmem>>, %arg2: memref<4x128xbf16, #tpu.memory_space<vmem>>, %arg3: memref<1x128xf32, #tpu.memory_space<vmem>>, %arg4: memref<128x128xbf16, #tpu.memory_space<vmem>>, %arg5: memref<1x128xf32, #tpu.memory_space<vmem>>, %arg6: memref<128x128xbf16, #tpu.memory_space<vmem>>, %arg7: memref<1x8xf32, #tpu.memory_space<vmem>>, %arg8: memref<8x8xf32, #tpu.memory_space<vmem>>) attributes {dimension_semantics = [#tpu.dimension_semantics<parallel>], iteration_bounds = array<i64: 1>, scalar_prefetch = 0 : i64, scratch_operands = 0 : i64, tpu.core_type = #tpu.core_type<tc>, window_params = [{transform_indices = @transform_0, window_bounds = array<i64: 8, 4>}, {pipeline_mode = #tpu.pipeline_mode<synchronous>, transform_indices = @transform_1, window_bounds = array<i64: 4, 128>}, {pipeline_mode = #tpu.pipeline_mode<synchronous>, transform_indices = @transform_2, window_bounds = array<i64: 1, 128>}, {pipeline_mode = #tpu.pipeline_mode<synchronous>, transform_indices = @transform_3, window_bounds = array<i64: 128, 128>}, {pipeline_mode = #tpu.pipeline_mode<synchronous>, transform_indices = @transform_4, window_bounds = array<i64: 1, 128>}, {pipeline_mode = #tpu.pipeline_mode<synchronous>, transform_indices = @transform_5, window_bounds = array<i64: 128, 128>}, {pipeline_mode = #tpu.pipeline_mode<synchronous>, transform_indices = @transform_6, window_bounds = array<i64: 1, 8>}, {transform_indices = @transform_7, window_bounds = array<i64: 8, 8>}]} {
    %c0 = arith.constant 0 : index
    %c0_0 = arith.constant 0 : index
    %0 = vector.load %arg1[%c0, %c0_0] : memref<8x4xbf16, #tpu.memory_space<vmem>>, vector<8x4xbf16>
    %c0_1 = arith.constant 0 : index
    %c0_2 = arith.constant 0 : index
    %1 = vector.load %arg2[%c0_1, %c0_2] : memref<4x128xbf16, #tpu.memory_space<vmem>>, vector<4x128xbf16>
    %cst = arith.constant dense<0.000000e+00> : vector<8x128xf32>
    %2 = tpu.matmul %0, %1, %cst {dimension_numbers = #tpu.dot_dimension_numbers<[1], [0], [0], [1], [0, 0, 1, 1], [], []>} : vector<8x4xbf16>, vector<4x128xbf16>, vector<8x128xf32> -> vector<8x128xf32>
    %c0_3 = arith.constant 0 : index
    %c0_4 = arith.constant 0 : index
    %3 = vector.load %arg3[%c0_3, %c0_4] : memref<1x128xf32, #tpu.memory_space<vmem>>, vector<1x128xf32>
    %4 = vector.broadcast %3 : vector<1x128xf32> to vector<8x128xf32>
    %5 = arith.addf %2, %4 : vector<8x128xf32>
    %cst_5 = arith.constant 0.000000e+00 : f32
    %6 = vector.broadcast %cst_5 : f32 to vector<8x128xf32>
    %7 = arith.maximumf %5, %6 : vector<8x128xf32>
    %8 = arith.truncf %7 : vector<8x128xf32> to vector<8x128xbf16>
    %c0_6 = arith.constant 0 : index
    %c0_7 = arith.constant 0 : index
    %9 = vector.load %arg4[%c0_6, %c0_7] : memref<128x128xbf16, #tpu.memory_space<vmem>>, vector<128x128xbf16>
    %cst_8 = arith.constant dense<0.000000e+00> : vector<8x128xf32>
    %10 = tpu.matmul %8, %9, %cst_8 {dimension_numbers = #tpu.dot_dimension_numbers<[1], [0], [0], [1], [0, 0, 1, 1], [], []>} : vector<8x128xbf16>, vector<128x128xbf16>, vector<8x128xf32> -> vector<8x128xf32>
    %c0_9 = arith.constant 0 : index
    %c0_10 = arith.constant 0 : index
    %11 = vector.load %arg5[%c0_9, %c0_10] : memref<1x128xf32, #tpu.memory_space<vmem>>, vector<1x128xf32>
    %12 = vector.broadcast %11 : vector<1x128xf32> to vector<8x128xf32>
    %13 = arith.addf %10, %12 : vector<8x128xf32>
    %cst_11 = arith.constant 0.000000e+00 : f32
    %14 = vector.broadcast %cst_11 : f32 to vector<8x128xf32>
    %15 = arith.maximumf %13, %14 : vector<8x128xf32>
    %16 = arith.truncf %15 : vector<8x128xf32> to vector<8x128xbf16>
    %c0_12 = arith.constant 0 : index
    %c0_13 = arith.constant 0 : index
    %17 = vector.load %arg6[%c0_12, %c0_13] : memref<128x128xbf16, #tpu.memory_space<vmem>>, vector<128x128xbf16>
    %cst_14 = arith.constant dense<0.000000e+00> : vector<8x128xf32>
    %18 = tpu.matmul %16, %17, %cst_14 {dimension_numbers = #tpu.dot_dimension_numbers<[1], [0], [0], [1], [0, 0, 1, 1], [], []>} : vector<8x128xbf16>, vector<128x128xbf16>, vector<8x128xf32> -> vector<8x128xf32>
    %19 = vector.extract_strided_slice %18 {offsets = [0, 0], sizes = [8, 8], strides = [1, 1]} : vector<8x128xf32> to vector<8x8xf32>
    %c0_15 = arith.constant 0 : index
    %c0_16 = arith.constant 0 : index
    %20 = vector.load %arg7[%c0_15, %c0_16] : memref<1x8xf32, #tpu.memory_space<vmem>>, vector<1x8xf32>
    %21 = vector.broadcast %20 : vector<1x8xf32> to vector<8x8xf32>
    %22 = arith.addf %19, %21 : vector<8x8xf32>
    %c0_17 = arith.constant 0 : index
    %c0_18 = arith.constant 0 : index
    %23 = vector.load %arg8[%c0_17, %c0_18] : memref<8x8xf32, #tpu.memory_space<vmem>>, vector<8x8xf32>
    tpu.vector_store %arg8[%c0_17, %c0_18], %22 {strides = array<i32>} : memref<8x8xf32, #tpu.memory_space<vmem>>, vector<8x8xf32>,
    return
  }
  func.func @transform_0(%arg0: i32) -> (i32, i32) {
    %c0_i32 = arith.constant 0 : i32
    %c0_i32_0 = arith.constant 0 : i32
    return %arg0, %c0_i32 : i32, i32
  }
  func.func @transform_1(%arg0: i32) -> (i32, i32) {
    %c0_i32 = arith.constant 0 : i32
    %c0_i32_0 = arith.constant 0 : i32
    %c0_i32_1 = arith.constant 0 : i32
    return %c0_i32, %c0_i32_0 : i32, i32
  }
  func.func @transform_2(%arg0: i32) -> (i32, i32) {
    %c0_i32 = arith.constant 0 : i32
    %c0_i32_0 = arith.constant 0 : i32
    %c0_i32_1 = arith.constant 0 : i32
    return %c0_i32, %c0_i32_0 : i32, i32
  }
  func.func @transform_3(%arg0: i32) -> (i32, i32) {
    %c0_i32 = arith.constant 0 : i32
    %c0_i32_0 = arith.constant 0 : i32
    %c0_i32_1 = arith.constant 0 : i32
    return %c0_i32, %c0_i32_0 : i32, i32
  }
  func.func @transform_4(%arg0: i32) -> (i32, i32) {
    %c0_i32 = arith.constant 0 : i32
    %c0_i32_0 = arith.constant 0 : i32
    %c0_i32_1 = arith.constant 0 : i32
    return %c0_i32, %c0_i32_0 : i32, i32
  }
  func.func @transform_5(%arg0: i32) -> (i32, i32) {
    %c0_i32 = arith.constant 0 : i32
    %c0_i32_0 = arith.constant 0 : i32
    %c0_i32_1 = arith.constant 0 : i32
    return %c0_i32, %c0_i32_0 : i32, i32
  }
  func.func @transform_6(%arg0: i32) -> (i32, i32) {
    %c0_i32 = arith.constant 0 : i32
    %c0_i32_0 = arith.constant 0 : i32
    %c0_i32_1 = arith.constant 0 : i32
    return %c0_i32, %c0_i32_0 : i32, i32
  }
  func.func @transform_7(%arg0: i32) -> (i32, i32) {
    %c0_i32 = arith.constant 0 : i32
    %c0_i32_0 = arith.constant 0 : i32
    return %arg0, %c0_i32 : i32, i32
  }
}

</mosaic_0001>

<bundles_post_ra>
// kernel: qnetwork_forward.1
= control target key start
LH: loop header
LB: loop body
LE: loop exit
PB: predicated region body
PF: predicated region fallthrough
CT: control target
= control target key end

     0   :  { %12 = vsyncpa [#allocation3], 0  ;;  %s614_s0 = inlined_call_operand.vmem [shape: bf16[8,4], index: 0, kind: input, shape index: {}]   ;;  %s615_s1 = inlined_call_operand.vmem [shape: bf16[4,128], index: 1, kind: input, shape index: {}]   ;;  %s616_s2 = inlined_call_operand.vmem [shape: f32[1,128], index: 2, kind: input, shape index: {}]   ;;  %s617_s3 = inlined_call_operand.hbm [shape: bf16[128,128], index: 3, kind: input, shape index: {}]   ;;  %s618_s4 = inlined_call_operand.vmem [shape: f32[1,128], index: 4, kind: input, shape index: {}]   ;;  %s619_s5 = inlined_call_operand.hbm [shape: bf16[128,128], index: 5, kind: input, shape index: {}]   ;;  %s620_s6 = inlined_call_operand.vmem [shape: f32[1,8], index: 6, kind: input, shape index: {}]   ;;  %s621_s7 = inlined_call_operand.vmem [shape: f32[8,8], index: 7, kind: output, shape index: {}]  }
   0x1   :  { %13 = vsyncpa [#allocation5], 0  ;;  %s503_s24 = smov [#allocation2]   ;;  %s455_s28 = scalar_lea.hbm %s617_s3, 1024 }
   0x2   :  { %s25_s25 = sshll.u32 %s503_s24, 4  ;;  %p456_p0 = scmp.ne.s32.totalorder %s617_s3, %s455_s28  ;;  %s26_s25 = int_to_ptr.vmem [resolvable:$true] %s25_s25 }
   0x3   :  { %p459_p1 = scmp.lt.u32.totalorder %s455_s28, %s617_s3 }
   0x5   :  { %p461_p2 = pnand %p459_p1, %p456_p0 }
   0x7   :  { %464 = shalt.err (!%p461_p2)
}
   0x8   :  { %s465_s10 = scalar_lea.vmem %s26_s25, 1024  ;;  %p470_p4 = scmp.lt.s32.totalorder %s26_s25, %s26_s25 }
   0x9   :  { %p466_p3 = scmp.ne.s32.totalorder %s26_s25, %s465_s10  ;;  %p471_p5 = scmp.lt.s32.totalorder %s465_s10, %s465_s10 }
   0xb   :  { %p472_p6 = por %p471_p5, %p470_p4 }
   0xd   :  { %p473_p7 = pnand %p472_p6, %p466_p3 }
   0xf   :  { %476 = shalt.err (!%p473_p7)
}
  0x10   :  { %s504_s11 = smov 64   ;;  %s505_s12 = smov 4  }
  0x11   :  { %31 = dma.hbm_to_vmem [thread:$0]  %s617_s3, 1024, %s26_s25, [#allocation3], %s504_s11, %s504_s11, %s505_s12  }
  0x12   :  { %s506_s15 = smov [#allocation4]   ;;  %s477_s19 = scalar_lea.hbm %s619_s5, 1024 }
  0x13   :  { %s39_s16 = sshll.u32 %s506_s15, 4  ;;  %p478_p8 = scmp.ne.s32.totalorder %s619_s5, %s477_s19  ;;  %s40_s16 = int_to_ptr.vmem [resolvable:$true] %s39_s16 }
  0x14   :  { %p481_p9 = scmp.lt.u32.totalorder %s477_s19, %s619_s5 }
  0x16   :  { %p483_p10 = pnand %p481_p9, %p478_p8 }
  0x18   :  { %486 = shalt.err (!%p483_p10)
}
  0x19   :  { %s487_s24 = scalar_lea.vmem %s40_s16, 1024  ;;  %p492_p12 = scmp.lt.s32.totalorder %s40_s16, %s40_s16 }
  0x1a   :  { %p488_p11 = scmp.ne.s32.totalorder %s40_s16, %s487_s24  ;;  %p493_p13 = scmp.lt.s32.totalorder %s487_s24, %s487_s24 }
  0x1c   :  { %p494_p0 = por %p493_p13, %p492_p12 }
  0x1e   :  { %p495_p1 = pnand %p494_p0, %p488_p11 }
  0x20   :  { %498 = shalt.err (!%p495_p1)
}
  0x21   :  { %45 = dma.hbm_to_vmem [thread:$0]  %s619_s5, 1024, %s40_s16, [#allocation5], %s504_s11, %s504_s11, %s505_s12  }
  0x22   :  { %499 = dma.done.wait [#allocation3], 1024  }
  0x23   :  { %500 = vsyncadd [#allocation3], 4294966272 }
  0x24   :  { %501 = dma.done.wait [#allocation5], 1024  }
  0x25   :  { %502 = vsyncadd [#allocation5], 4294966272  ;;  %v507_v0 = vmov 0.0   ;;  %vm508_vm0 = vmmov 0   ;;  %vm68_vm1 = vcmask 1041408   ;;  %vm64_vm2 = vcmask 31744  }
  0x26   :  { %387 = vmatprep.subr.bf16.mxu0 %v507_v0  ;;  %389 = vmatprep.mubr.msk.bf16.mxu0 %vm508_vm0, %v507_v0  ;;  %v56_v1 = vld [vmem:[%s615_s1] sm:$0x3]  ;;  %v440_v5 = vld [vmem:[#allocation2 + $0x8] sm:$0xff]   ;;  %v441_v6 = vld [vmem:[#allocation2 + $0x10] sm:$0xff]   ;;  %vm339_vm3 = vcmask 64512  }
  0x27   :  { %393 = vmatprep.subr.bf16.mxu1 %v507_v0  ;;  %409 = vmatprep.mubr.msk.bf16.mxu1 %vm508_vm0, %v507_v0  ;;  %v70_v2 = vsel %vm68_vm1, %v56_v1, 0  ;;  %v439_v3 = vld [vmem:[#allocation2] sm:$0xff]   ;;  %v442_v7 = vld [vmem:[#allocation2 + $0x18] sm:$0xff]   ;;  %v444_v9 = vld [vmem:[#allocation2 + $0x28] sm:$0xff]  }
  0x28   :  { %388 = vmatpush3.bf16.msra.mxu0 %v70_v2  ;;  %v55_v4 = vld [vmem:[%s614_s0] sm:$0xf]  ;;  %394 = vmatpush3.bf16.msra.mxu1 %v439_v3  ;;  %v445_v10 = vld [vmem:[#allocation2 + $0x30] sm:$0xff]   ;;  %v446_v11 = vld [vmem:[#allocation2 + $0x38] sm:$0xff]  }
  0x29   :  { %413 = vmatprep.subr.bf16.mxu0 %v507_v0  ;;  %395 = vmatprep.subr.bf16.mxu1 %v507_v0  ;;  %v443_v8 = vld [vmem:[#allocation2 + $0x20] sm:$0xff]   ;;  %v448_v13 = vld [vmem:[#allocation4 + $0x8] sm:$0xff]   ;;  %v449_v14 = vld [vmem:[#allocation4 + $0x10] sm:$0xff]  }
  0x2a   :  { %v447_v12 = vld [vmem:[#allocation4] sm:$0xff]   ;;  %v450_v15 = vld [vmem:[#allocation4 + $0x18] sm:$0xff]   ;;  %v452_v17 = vld [vmem:[#allocation4 + $0x28] sm:$0xff]  }
  0x2b   :  { %390 = vmatmul.mubr.msk.bf16.vlgmr.msra.gmra.mrb[0].mxu0 %vm64_vm2, %v55_v4  ;;  %v451_v16 = vld [vmem:[#allocation4 + $0x20] sm:$0xff]   ;;  %v453_v26 = vld [vmem:[#allocation4 + $0x30] sm:$0xff]   ;;  %v454_v27 = vld [vmem:[#allocation4 + $0x38] sm:$0xff]  }
  0x2c   :  { %429 = vmatprep.mubr.msk.bf16.mxu0 %vm508_vm0, %v507_v0  ;;  %396 = vmatpush3.bf16.msra.mxu1 %v440_v5  ;;  %v347_v18 = vld [vmem:[%s616_s2] ss:$0 sm:$0xff] }
  0x2d   :  { %397 = vmatprep.subr.bf16.mxu1 %v507_v0  ;;  %414 = vmatpush3.bf16.msra.mxu0 %v447_v12  ;;  %v349_v28 = vld [vmem:[%s618_s4] ss:$0 sm:$0xff] }
  0x2e   :  { %415 = vmatprep.subr.bf16.mxu0 %v507_v0  ;;  %v366_v36 = vld [vmem:[%s620_s6] ss:$0 sm:$0xff] }
  0x30   :  { %398 = vmatpush3.bf16.msra.mxu1 %v441_v6 }
  0x31   :  { %399 = vmatprep.subr.bf16.mxu1 %v507_v0  ;;  %416 = vmatpush3.bf16.msra.mxu0 %v448_v13 }
  0x32   :  { %417 = vmatprep.subr.bf16.mxu0 %v507_v0 }
  0x34   :  { %400 = vmatpush3.bf16.msra.mxu1 %v442_v7 }
  0x35   :  { %401 = vmatprep.subr.bf16.mxu1 %v507_v0  ;;  %418 = vmatpush3.bf16.msra.mxu0 %v449_v14 }
  0x36   :  { %419 = vmatprep.subr.bf16.mxu0 %v507_v0 }
  0x38   :  { %402 = vmatpush3.bf16.msra.mxu1 %v443_v8 }
  0x39   :  { %403 = vmatprep.subr.bf16.mxu1 %v507_v0  ;;  %420 = vmatpush3.bf16.msra.mxu0 %v450_v15 }
  0x3a   :  { %421 = vmatprep.subr.bf16.mxu0 %v507_v0 }
  0x3c   :  { %404 = vmatpush3.bf16.msra.mxu1 %v444_v9 }
  0x3d   :  { %405 = vmatprep.subr.bf16.mxu1 %v507_v0  ;;  %422 = vmatpush3.bf16.msra.mxu0 %v451_v16 }
  0x3e   :  { %423 = vmatprep.subr.bf16.mxu0 %v507_v0 }
  0x40   :  { %406 = vmatpush3.bf16.msra.mxu1 %v445_v10 }
  0x41   :  { %407 = vmatprep.subr.bf16.mxu1 %v507_v0  ;;  %424 = vmatpush3.bf16.msra.mxu0 %v452_v17 }
  0x42   :  { %425 = vmatprep.subr.bf16.mxu0 %v507_v0 }
  0x44   :  { %408 = vmatpush3.bf16.msra.mxu1 %v446_v11 }
  0x45   :  { %426 = vmatpush3.bf16.msra.mxu0 %v453_v26 }
  0x46   :  { %427 = vmatprep.subr.bf16.mxu0 %v507_v0 }
  0x49   :  { %428 = vmatpush3.bf16.msra.mxu0 %v454_v27 }
  0xfe   :  { %v106_v19 = vpop.f32.mrb[0].mxu0 }
  0xff   :  { %v107_v20 = vadd.f32 %v347_v18, %v106_v19  ;;  %v391_v21 = vpop.f32.mrb[1].mxu0 }
 0x100   :  { %v109_v22 = vpop.f32.mrb[2].mxu0 }
 0x101   :  { %v112_v23 = vmax.f32 %v107_v20, 0.0  ;;  %v392_v24 = vpop.f32.mrb[3].mxu0 }
 0x103   :  { %v113_v25 = vpack.c.bf16 %v112_v23, %v112_v23 }
 0x105   :  { %410 = vmatmul.mubr.bf16.vlgmr.msra.gmra.mrb[0].mxu1 %v113_v25 }
 0x1d8   :  { %v219_v29 = vpop.f32.mrb[0].mxu1 }
 0x1d9   :  { %v220_v30 = vadd.f32 %v349_v28, %v219_v29  ;;  %v411_v31 = vpop.f32.mrb[1].mxu1 }
 0x1da   :  { %v222_v32 = vpop.f32.mrb[2].mxu1 }
 0x1db   :  { %v225_v33 = vmax.f32 %v220_v30, 0.0  ;;  %v412_v34 = vpop.f32.mrb[3].mxu1 }
 0x1dd   :  { %v226_v35 = vpack.c.bf16 %v225_v33, %v225_v33 }
 0x1df   :  { %430 = vmatmul.mubr.bf16.vlgmr.msra.gmra.mrb[4].mxu0 %v226_v35 }
 0x2b2   :  { %v325_v37 = vpop.f32.mrb[4].mxu0 }
 0x2b3   :  { %v338_v38 = vadd.f32 %v366_v36, %v325_v37  ;;  %v431_v39 = vpop.f32.mrb[5].mxu0 }
 0x2b4   :  { %v328_v40 = vpop.f32.mrb[6].mxu0 }
 0x2b5   :  { %340 = vst.msk [vmem:[%s621_s7] sm:$0xff] %vm339_vm3, %v338_v38  ;;  %v432_v41 = vpop.f32.mrb[7].mxu0 }
 0x2b6   :  { %345 = vsyncpa [#allocation3], 1 }
 0x2b7   :  { %346 = vsyncpa [#allocation5], 1 }

</bundles_post_ra>
